<compile_context>
chip_gen: v7x
topology: tpu7x:2x2x1
jax: 0.10.0
libtpu: 0.0.40
codegen_flags: <defaults>
</compile_context>

<pallas_src>
import jax
import jax.numpy as jnp
from jax.experimental import pallas as pl
from jax.experimental.pallas import tpu as pltpu


def _round_up(x, m):
    return (x + m - 1) // m * m


# ----------------------------------------------------------------------------
# exact erf (same rational polynomial XLA uses for f32 erf) -> only mul/add and
# one EUP reciprocal, so it lowers cleanly inside a Pallas TPU kernel.
# ----------------------------------------------------------------------------
_ERF_ALPHA = (-2.72614225801306e-10, 2.77068142495902e-08, -2.10102402082508e-06,
              -5.69250639462346e-05, -7.34990630326855e-04, -2.95459980854025e-03,
              -1.60960333262415e-02)
_ERF_BETA = (-1.45660718464996e-05, -2.13374055278905e-04, -1.68282697438203e-03,
             -7.37332916720468e-03, -1.42647390514189e-02)


def _erf_f32(x):
    x = jnp.clip(x, -4.0, 4.0)
    z = x * x
    p = jnp.full_like(z, _ERF_ALPHA[0])
    for a in _ERF_ALPHA[1:]:
        p = p * z + a
    p = p * x
    q = jnp.full_like(z, _ERF_BETA[0])
    for b in _ERF_BETA[1:]:
        q = q * z + b
    # explicit reciprocal -> EUP slot (otherwise idle while MXU/VPU work)
    return p * pl.reciprocal(q, approx=False)


def _gelu_exact(x):
    # torch.nn.GELU() default (approximate='none'): 0.5*x*(1+erf(x/sqrt(2)))
    return 0.5 * x * (1.0 + _erf_f32(x * 0.7071067811865476))


# ----------------------------------------------------------------------------
# Kernel 1: AdaptorMLP  (ada_emb = GELU(x @ W1^T) @ W2^T), tiled over rows and
# over the 3H intermediate axis (reduction -> f32 accumulator in VMEM).
# ----------------------------------------------------------------------------
def _adaptor_mlp_kernel(x_ref, w1_ref, w2_ref, out_ref, acc_ref):
    k = pl.program_id(1)

    @pl.when(k == 0)
    def _():
        acc_ref[...] = jnp.zeros_like(acc_ref)

    # (tm, H) x (H, tk) -> (tm, tk), f32 accumulation on the MXU
    h = jnp.dot(x_ref[...], w1_ref[...], preferred_element_type=jnp.float32)
    h = _gelu_exact(h)
    # GELU is elementwise, so the second matmul can be accumulated per K-tile.
    acc_ref[...] += jnp.dot(h.astype(w2_ref.dtype), w2_ref[...],
                            preferred_element_type=jnp.float32)

    @pl.when(k == pl.num_programs(1) - 1)
    def _():
        out_ref[...] = acc_ref[...].astype(out_ref.dtype)


def adaptor_mlp(x2d, w1t, w2t, *, tm, tk):
    Mp, H = x2d.shape
    H3p = w1t.shape[1]
    assert Mp % tm == 0 and H3p % tk == 0
    cost = pl.CostEstimate(
        flops=4 * Mp * H * H3p,
        transcendentals=Mp * H3p,
        bytes_accessed=2 * (Mp * H + 2 * H * H3p + Mp * H),
    )
    return pl.pallas_call(
        _adaptor_mlp_kernel,
        out_shape=jax.ShapeDtypeStruct((Mp, H), jnp.bfloat16),
        grid_spec=pltpu.PrefetchScalarGridSpec(
            num_scalar_prefetch=0,
            grid=(Mp // tm, H3p // tk),
            in_specs=[
                pl.BlockSpec((tm, H), lambda i, k: (i, 0)),   # x tile, resident over k
                pl.BlockSpec((H, tk), lambda i, k: (0, k)),   # W1 tile
                pl.BlockSpec((tk, H), lambda i, k: (k, 0)),   # W2 tile
            ],
            out_specs=pl.BlockSpec((tm, H), lambda i, k: (i, 0)),
            scratch_shapes=[pltpu.VMEM((tm, H), jnp.float32)],
        ),
        compiler_params=pltpu.CompilerParams(
            dimension_semantics=("parallel", "arbitrary"),
            vmem_limit_bytes=48 * 1024 * 1024,
        ),
        cost_estimate=cost,
    )(x2d, w1t, w2t)


# ----------------------------------------------------------------------------
# Kernel 2: lm_head applied to BOTH hidden and ada_emb.  Tiled (M, V); the two
# row tiles are stacked into one (2*tm, H) LHS so the (H, tv) weight tile feeds
# a single MXU push and is streamed from HBM once per (i, j) step.
# ----------------------------------------------------------------------------
def _lm_head_kernel(x_ref, ada_ref, w_ref, lm_ref, ada_out_ref):
    tm = x_ref.shape[0]
    xa = jnp.concatenate([x_ref[...], ada_ref[...]], axis=0)          # (2*tm, H)
    out = jnp.dot(xa, w_ref[...], preferred_element_type=jnp.float32)  # (2*tm, tv)
    lm_ref[...] = out[:tm].astype(lm_ref.dtype)
    ada_out_ref[...] = out[tm:].astype(ada_out_ref.dtype)


def lm_head_both(x2d, ada2d, wlmt, *, tm, tv):
    Mp, H = x2d.shape
    Vp = wlmt.shape[1]
    assert Mp % tm == 0 and Vp % tv == 0
    cost = pl.CostEstimate(
        flops=4 * Mp * H * Vp,
        transcendentals=0,
        bytes_accessed=2 * (2 * Mp * H + H * Vp) + 4 * 2 * Mp * Vp,
    )
    return pl.pallas_call(
        _lm_head_kernel,
        out_shape=(
            jax.ShapeDtypeStruct((Mp, Vp), jnp.float32),
            jax.ShapeDtypeStruct((Mp, Vp), jnp.float32),
        ),
        grid_spec=pltpu.PrefetchScalarGridSpec(
            num_scalar_prefetch=0,
            grid=(Mp // tm, Vp // tv),
            in_specs=[
                pl.BlockSpec((tm, H), lambda i, j: (i, 0)),   # hidden tile (resident over j)
                pl.BlockSpec((tm, H), lambda i, j: (i, 0)),   # ada tile    (resident over j)
                pl.BlockSpec((H, tv), lambda i, j: (0, j)),   # lm_head weight tile
            ],
            out_specs=[
                pl.BlockSpec((tm, tv), lambda i, j: (i, j)),
                pl.BlockSpec((tm, tv), lambda i, j: (i, j)),
            ],
        ),
        compiler_params=pltpu.CompilerParams(
            dimension_semantics=("parallel", "parallel"),
            vmem_limit_bytes=48 * 1024 * 1024,
        ),
        cost_estimate=cost,
    )(x2d, ada2d, wlmt)


# ----------------------------------------------------------------------------
# AdaLlamaHead forward
# ----------------------------------------------------------------------------
def ada_llama_head_forward(hidden_states, params, *, tm=256, tv=512, tk=512):
    """hidden_states: (B, S, H) f32. params: pre-transposed (in, out) weights.
    Returns (lm_logits, ada_logits), each (B, S, V) float32."""
    B, S, H = hidden_states.shape
    H3 = params["w1t"].shape[1]
    V = params["wlmt"].shape[1]
    M = B * S

    # bf16 matmul inputs (f32 accumulation happens inside the kernels)
    x2d = hidden_states.reshape(M, H).astype(jnp.bfloat16)
    w1 = params["w1t"].astype(jnp.bfloat16)
    w2 = params["w2t"].astype(jnp.bfloat16)
    wlm = params["wlmt"].astype(jnp.bfloat16)

    # Clamp tile sizes to the problem and pad so tiles divide evenly.
    tm_e = min(tm, _round_up(M, 16))          # 16-row alignment (bf16 sublane packing)
    Mp = _round_up(M, tm_e)
    tk_e = H3 if H3 <= tk else tk
    H3p = _round_up(H3, tk_e)
    tv_e = min(tv, _round_up(V, 128))
    Vp = _round_up(V, tv_e)

    if Mp != M:
        x2d = jnp.pad(x2d, ((0, Mp - M), (0, 0)))
    if H3p != H3:
        w1 = jnp.pad(w1, ((0, 0), (0, H3p - H3)))
        w2 = jnp.pad(w2, ((0, H3p - H3), (0, 0)))
    if Vp != V:
        wlm = jnp.pad(wlm, ((0, 0), (0, Vp - V)))

    ada2d = adaptor_mlp(x2d, w1, w2, tm=tm_e, tk=tk_e)            # (Mp, H) bf16
    lm2d, ada_logits2d = lm_head_both(x2d, ada2d, wlm, tm=tm_e, tv=tv_e)

    lm_logits = lm2d[:M, :V].reshape(B, S, V)
    ada_logits = ada_logits2d[:M, :V].reshape(B, S, V)
    return lm_logits, ada_logits


def _reference_forward(hidden_states, params):
    # pure-JAX f32 reference using the true erf (non-circular check)
    from jax.scipy.special import erf
    x = hidden_states.astype(jnp.float32)
    h = x @ params["w1t"]
    h = 0.5 * h * (1.0 + erf(h * 0.7071067811865476))
    ada = h @ params["w2t"]
    return x @ params["wlmt"], ada @ params["wlmt"]


if __name__ == "__main__":
    # small shapes consistent with the module: batch=2, seq=8, hidden=32, vocab=256
    B, S, H, V = 2, 8, 32, 256
    H3 = 3 * H  # AdaptorMLP hidden_features = hidden_size * 3

    key = jax.random.PRNGKey(0)
    k_x, k_w1, k_w2, k_lm = jax.random.split(key, 4)

    hidden_states = jax.random.normal(k_x, (B, S, H), dtype=jnp.float32)

    # torch Linear stores weight as (out, in); keep that for init, pass (in, out).
    w1 = jax.random.normal(k_w1, (H3, H), dtype=jnp.float32) * (1.0 / jnp.sqrt(H))
    w2 = jax.random.normal(k_w2, (H, H3), dtype=jnp.float32) * (1.0 / jnp.sqrt(H3))
    wlm = jax.random.normal(k_lm, (V, H), dtype=jnp.float32) * (1.0 / jnp.sqrt(H))

    params = {"w1t": w1.T, "w2t": w2.T, "wlmt": wlm.T}

    fwd = jax.jit(ada_llama_head_forward)
    lm_logits, ada_logits = fwd(hidden_states, params)
    jax.block_until_ready((lm_logits, ada_logits))

    # sanity check against pure-JAX f32 reference (bf16 matmul inputs -> looser tol)
    ref_lm, ref_ada = _reference_forward(hidden_states, params)
    assert lm_logits.shape == (B, S, V) and ada_logits.shape == (B, S, V)
    assert jnp.allclose(lm_logits, ref_lm, rtol=4e-2, atol=4e-2), \
        float(jnp.max(jnp.abs(lm_logits - ref_lm)))
    assert jnp.allclose(ada_logits, ref_ada, rtol=4e-2, atol=4e-2), \
        float(jnp.max(jnp.abs(ada_logits - ref_ada)))

    print("KERNEL_OK")
</pallas_src>

<mosaic_0001>
module attributes {stable_mosaic.version = 11 : i64} {
  func.func @_adaptor_mlp_kernel(%arg0: i32, %arg1: i32, %arg2: memref<16x32xbf16, #tpu.memory_space<vmem>>, %arg3: memref<32x96xbf16, #tpu.memory_space<vmem>>, %arg4: memref<96x32xbf16, #tpu.memory_space<vmem>>, %arg5: memref<16x32xbf16, #tpu.memory_space<vmem>>, %arg6: memref<16x32xf32, #tpu.memory_space<vmem>>) attributes {dimension_semantics = [#tpu.dimension_semantics<parallel>, #tpu.dimension_semantics<arbitrary>], iteration_bounds = array<i64: 1, 1>, scalar_prefetch = 0 : i64, scratch_operands = 1 : i64, tpu.core_type = #tpu.core_type<tc>, window_params = [{transform_indices = @transform_0, window_bounds = array<i64: 16, 32>}, {transform_indices = @transform_1, window_bounds = array<i64: 32, 96>}, {transform_indices = @transform_2, window_bounds = array<i64: 96, 32>}, {transform_indices = @transform_3, window_bounds = array<i64: 16, 32>}]} {
    %c0_i32 = arith.constant 0 : i32
    %0 = arith.cmpi eq, %arg1, %c0_i32 : i32
    %1 = arith.extui %0 : i1 to i32
    %c0_i32_0 = arith.constant 0 : i32
    %2 = arith.cmpi ne, %1, %c0_i32_0 : i32
    scf.if %2 {
      %cst_30 = arith.constant 0.000000e+00 : f32
      %62 = vector.broadcast %cst_30 : f32 to vector<16x32xf32>
      %c0_31 = arith.constant 0 : index
      %c0_32 = arith.constant 0 : index
      %63 = vector.load %arg6[%c0_31, %c0_32] : memref<16x32xf32, #tpu.memory_space<vmem>>, vector<16x32xf32>
      tpu.vector_store %arg6[%c0_31, %c0_32], %62 {strides = array<i32>} : memref<16x32xf32, #tpu.memory_space<vmem>>, vector<16x32xf32>,
    } else {
    }
    %c0 = arith.constant 0 : index
    %c0_1 = arith.constant 0 : index
    %3 = vector.load %arg2[%c0, %c0_1] : memref<16x32xbf16, #tpu.memory_space<vmem>>, vector<16x32xbf16>
    %c0_2 = arith.constant 0 : index
    %c0_3 = arith.constant 0 : index
    %4 = vector.load %arg3[%c0_2, %c0_3] : memref<32x96xbf16, #tpu.memory_space<vmem>>, vector<32x96xbf16>
    %cst = arith.constant dense<0.000000e+00> : vector<16x96xf32>
    %5 = tpu.matmul %3, %4, %cst {dimension_numbers = #tpu.dot_dimension_numbers<[1], [0], [0], [1], [0, 0, 1, 1], [], []>} : vector<16x32xbf16>, vector<32x96xbf16>, vector<16x96xf32> -> vector<16x96xf32>
    %cst_4 = arith.constant 5.000000e-01 : f32
    %6 = vector.broadcast %cst_4 : f32 to vector<16x96xf32>
    %7 = arith.mulf %6, %5 : vector<16x96xf32>
    %cst_5 = arith.constant 0.707106769 : f32
    %8 = vector.broadcast %cst_5 : f32 to vector<16x96xf32>
    %9 = arith.mulf %5, %8 : vector<16x96xf32>
    %cst_6 = arith.constant -4.000000e+00 : f32
    %cst_7 = arith.constant 4.000000e+00 : f32
    %10 = vector.broadcast %cst_6 : f32 to vector<16x96xf32>
    %11 = arith.maximumf %10, %9 : vector<16x96xf32>
    %12 = vector.broadcast %cst_7 : f32 to vector<16x96xf32>
    %13 = arith.minimumf %12, %11 : vector<16x96xf32>
    %14 = arith.mulf %13, %13 : vector<16x96xf32>
    %cst_8 = arith.constant -2.72614237E-10 : f32
    %15 = vector.broadcast %cst_8 : f32 to vector<16x96xf32>
    %16 = arith.mulf %15, %14 : vector<16x96xf32>
    %cst_9 = arith.constant 2.77068146E-8 : f32
    %17 = vector.broadcast %cst_9 : f32 to vector<16x96xf32>
    %18 = arith.addf %16, %17 : vector<16x96xf32>
    %19 = arith.mulf %18, %14 : vector<16x96xf32>
    %cst_10 = arith.constant -2.10102394E-6 : f32
    %20 = vector.broadcast %cst_10 : f32 to vector<16x96xf32>
    %21 = arith.addf %19, %20 : vector<16x96xf32>
    %22 = arith.mulf %21, %14 : vector<16x96xf32>
    %cst_11 = arith.constant -5.69250624E-5 : f32
    %23 = vector.broadcast %cst_11 : f32 to vector<16x96xf32>
    %24 = arith.addf %22, %23 : vector<16x96xf32>
    %25 = arith.mulf %24, %14 : vector<16x96xf32>
    %cst_12 = arith.constant -7.34990637E-4 : f32
    %26 = vector.broadcast %cst_12 : f32 to vector<16x96xf32>
    %27 = arith.addf %25, %26 : vector<16x96xf32>
    %28 = arith.mulf %27, %14 : vector<16x96xf32>
    %cst_13 = arith.constant -2.954600e-03 : f32
    %29 = vector.broadcast %cst_13 : f32 to vector<16x96xf32>
    %30 = arith.addf %28, %29 : vector<16x96xf32>
    %31 = arith.mulf %30, %14 : vector<16x96xf32>
    %cst_14 = arith.constant -0.0160960332 : f32
    %32 = vector.broadcast %cst_14 : f32 to vector<16x96xf32>
    %33 = arith.addf %31, %32 : vector<16x96xf32>
    %34 = arith.mulf %33, %13 : vector<16x96xf32>
    %cst_15 = arith.constant -1.45660715E-5 : f32
    %35 = vector.broadcast %cst_15 : f32 to vector<16x96xf32>
    %36 = arith.mulf %35, %14 : vector<16x96xf32>
    %cst_16 = arith.constant -2.13374049E-4 : f32
    %37 = vector.broadcast %cst_16 : f32 to vector<16x96xf32>
    %38 = arith.addf %36, %37 : vector<16x96xf32>
    %39 = arith.mulf %38, %14 : vector<16x96xf32>
    %cst_17 = arith.constant -0.00168282702 : f32
    %40 = vector.broadcast %cst_17 : f32 to vector<16x96xf32>
    %41 = arith.addf %39, %40 : vector<16x96xf32>
    %42 = arith.mulf %41, %14 : vector<16x96xf32>
    %cst_18 = arith.constant -0.00737332925 : f32
    %43 = vector.broadcast %cst_18 : f32 to vector<16x96xf32>
    %44 = arith.addf %42, %43 : vector<16x96xf32>
    %45 = arith.mulf %44, %14 : vector<16x96xf32>
    %cst_19 = arith.constant -0.0142647391 : f32
    %46 = vector.broadcast %cst_19 : f32 to vector<16x96xf32>
    %47 = arith.addf %45, %46 : vector<16x96xf32>
    %48 = tpu.reciprocal %47 : vector<16x96xf32> -> vector<16x96xf32>
    %49 = arith.mulf %34, %48 : vector<16x96xf32>
    %cst_20 = arith.constant 1.000000e+00 : f32
    %50 = vector.broadcast %cst_20 : f32 to vector<16x96xf32>
    %51 = arith.addf %50, %49 : vector<16x96xf32>
    %52 = arith.mulf %7, %51 : vector<16x96xf32>
    %c0_21 = arith.constant 0 : index
    %c0_22 = arith.constant 0 : index
    %53 = vector.load %arg6[%c0_21, %c0_22] : memref<16x32xf32, #tpu.memory_space<vmem>>, vector<16x32xf32>
    %54 = arith.truncf %52 : vector<16x96xf32> to vector<16x96xbf16>
    %c0_23 = arith.constant 0 : index
    %c0_24 = arith.constant 0 : index
    %55 = vector.load %arg4[%c0_23, %c0_24] : memref<96x32xbf16, #tpu.memory_space<vmem>>, vector<96x32xbf16>
    %cst_25 = arith.constant dense<0.000000e+00> : vector<16x32xf32>
    %56 = tpu.matmul %54, %55, %cst_25 {dimension_numbers = #tpu.dot_dimension_numbers<[1], [0], [0], [1], [0, 0, 1, 1], [], []>} : vector<16x96xbf16>, vector<96x32xbf16>, vector<16x32xf32> -> vector<16x32xf32>
    %57 = arith.addf %53, %56 : vector<16x32xf32>
    %c0_26 = arith.constant 0 : index
    %c0_27 = arith.constant 0 : index
    %58 = vector.load %arg6[%c0_26, %c0_27] : memref<16x32xf32, #tpu.memory_space<vmem>>, vector<16x32xf32>
    tpu.vector_store %arg6[%c0_26, %c0_27], %57 {strides = array<i32>} : memref<16x32xf32, #tpu.memory_space<vmem>>, vector<16x32xf32>,
    %c0_i32_28 = arith.constant 0 : i32
    %59 = arith.cmpi eq, %arg1, %c0_i32_28 : i32
    %60 = arith.extui %59 : i1 to i32
    %c0_i32_29 = arith.constant 0 : i32
    %61 = arith.cmpi ne, %60, %c0_i32_29 : i32
    scf.if %61 {
      %c0_30 = arith.constant 0 : index
      %c0_31 = arith.constant 0 : index
      %62 = vector.load %arg6[%c0_30, %c0_31] : memref<16x32xf32, #tpu.memory_space<vmem>>, vector<16x32xf32>
      %63 = arith.truncf %62 : vector<16x32xf32> to vector<16x32xbf16>
      %c0_32 = arith.constant 0 : index
      %c0_33 = arith.constant 0 : index
      %64 = vector.load %arg5[%c0_32, %c0_33] : memref<16x32xbf16, #tpu.memory_space<vmem>>, vector<16x32xbf16>
      tpu.vector_store %arg5[%c0_32, %c0_33], %63 {strides = array<i32>} : memref<16x32xbf16, #tpu.memory_space<vmem>>, vector<16x32xbf16>,
    } else {
    }
    return
  }
  func.func @transform_0(%arg0: i32, %arg1: i32) -> (i32, i32) {
    %c0_i32 = arith.constant 0 : i32
    %c0_i32_0 = arith.constant 0 : i32
    return %arg0, %c0_i32 : i32, i32
  }
  func.func @transform_1(%arg0: i32, %arg1: i32) -> (i32, i32) {
    %c0_i32 = arith.constant 0 : i32
    %c0_i32_0 = arith.constant 0 : i32
    return %c0_i32, %arg1 : i32, i32
  }
  func.func @transform_2(%arg0: i32, %arg1: i32) -> (i32, i32) {
    %c0_i32 = arith.constant 0 : i32
    %c0_i32_0 = arith.constant 0 : i32
    return %arg1, %c0_i32 : i32, i32
  }
  func.func @transform_3(%arg0: i32, %arg1: i32) -> (i32, i32) {
    %c0_i32 = arith.constant 0 : i32
    %c0_i32_0 = arith.constant 0 : i32
    return %arg0, %c0_i32 : i32, i32
  }
}

module attributes {stable_mosaic.version = 11 : i64} {
  func.func @_lm_head_kernel(%arg0: i32, %arg1: i32, %arg2: memref<16x32xbf16, #tpu.memory_space<vmem>>, %arg3: memref<16x32xbf16, #tpu.memory_space<vmem>>, %arg4: memref<32x256xbf16, #tpu.memory_space<vmem>>, %arg5: memref<16x256xf32, #tpu.memory_space<vmem>>, %arg6: memref<16x256xf32, #tpu.memory_space<vmem>>) attributes {dimension_semantics = [#tpu.dimension_semantics<parallel>, #tpu.dimension_semantics<parallel>], iteration_bounds = array<i64: 1, 1>, scalar_prefetch = 0 : i64, scratch_operands = 0 : i64, tpu.core_type = #tpu.core_type<tc>, window_params = [{transform_indices = @transform_0, window_bounds = array<i64: 16, 32>}, {transform_indices = @transform_1, window_bounds = array<i64: 16, 32>}, {transform_indices = @transform_2, window_bounds = array<i64: 32, 256>}, {transform_indices = @transform_3, window_bounds = array<i64: 16, 256>}, {transform_indices = @transform_4, window_bounds = array<i64: 16, 256>}]} {
    %c0 = arith.constant 0 : index
    %c0_0 = arith.constant 0 : index
    %0 = vector.load %arg2[%c0, %c0_0] : memref<16x32xbf16, #tpu.memory_space<vmem>>, vector<16x32xbf16>
    %c0_1 = arith.constant 0 : index
    %c0_2 = arith.constant 0 : index
    %1 = vector.load %arg3[%c0_1, %c0_2] : memref<16x32xbf16, #tpu.memory_space<vmem>>, vector<16x32xbf16>
    %2 = tpu.concatenate %0, %1 in 0 : vector<16x32xbf16>, vector<16x32xbf16> -> vector<32x32xbf16>
    %c0_3 = arith.constant 0 : index
    %c0_4 = arith.constant 0 : index
    %3 = vector.load %arg4[%c0_3, %c0_4] : memref<32x256xbf16, #tpu.memory_space<vmem>>, vector<32x256xbf16>
    %cst = arith.constant dense<0.000000e+00> : vector<32x256xf32>
    %4 = tpu.matmul %2, %3, %cst {dimension_numbers = #tpu.dot_dimension_numbers<[1], [0], [0], [1], [0, 0, 1, 1], [], []>} : vector<32x32xbf16>, vector<32x256xbf16>, vector<32x256xf32> -> vector<32x256xf32>
    %5 = vector.extract_strided_slice %4 {offsets = [0, 0], sizes = [16, 256], strides = [1, 1]} : vector<32x256xf32> to vector<16x256xf32>
    %c0_5 = arith.constant 0 : index
    %c0_6 = arith.constant 0 : index
    %6 = vector.load %arg5[%c0_5, %c0_6] : memref<16x256xf32, #tpu.memory_space<vmem>>, vector<16x256xf32>
    tpu.vector_store %arg5[%c0_5, %c0_6], %5 {strides = array<i32>} : memref<16x256xf32, #tpu.memory_space<vmem>>, vector<16x256xf32>,
    %7 = vector.extract_strided_slice %4 {offsets = [16, 0], sizes = [16, 256], strides = [1, 1]} : vector<32x256xf32> to vector<16x256xf32>
    %c0_7 = arith.constant 0 : index
    %c0_8 = arith.constant 0 : index
    %8 = vector.load %arg6[%c0_7, %c0_8] : memref<16x256xf32, #tpu.memory_space<vmem>>, vector<16x256xf32>
    tpu.vector_store %arg6[%c0_7, %c0_8], %7 {strides = array<i32>} : memref<16x256xf32, #tpu.memory_space<vmem>>, vector<16x256xf32>,
    return
  }
  func.func @transform_0(%arg0: i32, %arg1: i32) -> (i32, i32) {
    %c0_i32 = arith.constant 0 : i32
    %c0_i32_0 = arith.constant 0 : i32
    return %arg0, %c0_i32 : i32, i32
  }
  func.func @transform_1(%arg0: i32, %arg1: i32) -> (i32, i32) {
    %c0_i32 = arith.constant 0 : i32
    %c0_i32_0 = arith.constant 0 : i32
    return %arg0, %c0_i32 : i32, i32
  }
  func.func @transform_2(%arg0: i32, %arg1: i32) -> (i32, i32) {
    %c0_i32 = arith.constant 0 : i32
    %c0_i32_0 = arith.constant 0 : i32
    return %c0_i32, %arg1 : i32, i32
  }
  func.func @transform_3(%arg0: i32, %arg1: i32) -> (i32, i32) {
    %c0_i32 = arith.constant 0 : i32
    return %arg0, %arg1 : i32, i32
  }
  func.func @transform_4(%arg0: i32, %arg1: i32) -> (i32, i32) {
    %c0_i32 = arith.constant 0 : i32
    return %arg0, %arg1 : i32, i32
  }
}

</mosaic_0001>

<bundles_post_ra>
// kernel: ada_llama_head_forward.3
= control target key start
LH: loop header
LB: loop body
LE: loop exit
PB: predicated region body
PF: predicated region fallthrough
CT: control target
= control target key end

     0   :  { %10 = vsyncpa [#allocation3], 0  ;;  %v230_v2 = vmov 0   ;;  %s316_s0 = inlined_call_operand.vmem [shape: bf16[16,32], index: 0, kind: input, shape index: {}]   ;;  %s317_s1 = inlined_call_operand.vmem [shape: bf16[16,32], index: 1, kind: input, shape index: {}]   ;;  %s318_s2 = inlined_call_operand.vmem [shape: bf16[32,256], index: 2, kind: input, shape index: {}]   ;;  %s319_s3 = inlined_call_operand.hbm [shape: f32[16,256], index: 3, kind: output, shape index: {0}]   ;;  %s320_s4 = inlined_call_operand.hbm [shape: f32[16,256], index: 4, kind: output, shape index: {1}]  }
   0x1   :  { %v174_v0 = vld [vmem:[%s318_s2 + $0x4] ss:$8 sps:$4 sm:$0xff]   ;;  %v176_v1 = vld [vmem:[%s318_s2] ss:$8 sps:$4 sm:$0xff]   ;;  %96 = vmatprep.mubr.bf16.mxu0 %v230_v2  ;;  %106 = vmatprep.mubr.bf16.mxu1 %v230_v2  ;;  %v177_v3 = vld [vmem:[%s318_s2 + $0x14] ss:$8 sps:$4 sm:$0xff]  }
   0x2   :  { %64 = vmatprep.subr.bf16.mxu0 %v174_v0  ;;  %165 = vmatprep.subr.bf16.mxu1 %v174_v0  ;;  %v179_v4 = vld [vmem:[%s318_s2 + $0x10] ss:$8 sps:$4 sm:$0xff]  }
   0x3   :  { %65 = vmatpush1.bf16.msra.mxu0 %v176_v1  ;;  %167 = vmatpush1.bf16.msra.mxu1 %v176_v1 }
   0x4   :  { %66 = vmatprep.subr.bf16.mxu0 %v177_v3  ;;  %166 = vmatprep.subr.bf16.mxu1 %v177_v3 }
   0x5   :  { %11 = vsyncpa [#allocation5], 0  ;;  %v180_v5 = vld [vmem:[%s316_s0] sm:$0xff]   ;;  %vm57_vm0 = vcmask 261120   ;;  %s231_s27 = smov [#allocation2]   ;;  %s232_s2 = smov [#allocation4]  }
   0x6   :  { %v181_v6 = vld [vmem:[%s317_s1] sm:$0xff]   ;;  %s130_s28 = sshll.u32 %s231_s27, 4  ;;  %s142_s29 = sshll.u32 %s232_s2, 4  ;;  %s278_s28 = int_to_ptr.vmem [resolvable:$true] %s130_s28  ;;  %s280_s29 = int_to_ptr.vmem [resolvable:$true] %s142_s29 }
   0x7   :  { %67 = vmatpush1.bf16.msra.mxu0 %v179_v4  ;;  %168 = vmatpush1.bf16.msra.mxu1 %v179_v4  ;;  %s182_s0 = scalar_lea.vmem %s278_s28, 512  ;;  %p187_p1 = scmp.lt.s32.totalorder %s278_s28, %s278_s28 }
   0x8   :  { %p183_p0 = scmp.ne.s32.totalorder %s278_s28, %s182_s0  ;;  %p188_p2 = scmp.lt.s32.totalorder %s182_s0, %s182_s0 }
   0xa   :  { %163 = vmatmul.mubr.msk.bf16.vlgmr.msra.gmra.mrb[0].mxu0 %vm57_vm0, %v180_v5  ;;  %164 = vmatmul.mubr.msk.bf16.vlgmr.msra.gmra.mrb[0].mxu1 %vm57_vm0, %v181_v6  ;;  %p189_p3 = por %p188_p2, %p187_p1 }
   0xc   :  { %p190_p4 = pnand %p189_p3, %p183_p0 }
  0xdd   :  { %v98_v7 = vpop.f32.mrb[0].mxu0  ;;  %v108_v8 = vpop.f32.mrb[0].mxu1 }
  0xde   :  { %117 = vst [vmem:[#allocation2] sm:$0xff] %v98_v7  ;;  %121 = vst [vmem:[#allocation4] sm:$0xff] %v108_v8  ;;  %v100_v9 = vpop.f32.mrb[1].mxu0  ;;  %v110_v10 = vpop.f32.mrb[1].mxu1 }
  0xdf   :  { %118 = vst [vmem:[#allocation2 + $0x8] sm:$0xff] %v100_v9  ;;  %122 = vst [vmem:[#allocation4 + $0x8] sm:$0xff] %v110_v10  ;;  %v102_v11 = vpop.f32.mrb[2].mxu0  ;;  %v112_v12 = vpop.f32.mrb[2].mxu1 }
  0xe0   :  { %119 = vst [vmem:[#allocation2 + $0x10] sm:$0xff] %v102_v11  ;;  %123 = vst [vmem:[#allocation4 + $0x10] sm:$0xff] %v112_v12  ;;  %v104_v13 = vpop.f32.mrb[3].mxu0  ;;  %v114_v14 = vpop.f32.mrb[3].mxu1 }
  0xe1   :  { %120 = vst [vmem:[#allocation2 + $0x18] sm:$0xff] %v104_v13  ;;  %124 = vst [vmem:[#allocation4 + $0x18] sm:$0xff] %v114_v14 }
  0xe2   :  { %193 = shalt.err (!%p190_p4)
}
  0xe3   :  { %s194_s5 = scalar_lea.hbm %s319_s3, 512 }
  0xe4   :  { %p195_p5 = scmp.ne.s32.totalorder %s319_s3, %s194_s5  ;;  %p198_p6 = scmp.lt.u32.totalorder %s194_s5, %s319_s3 }
  0xe6   :  { %p200_p7 = pnand %p198_p6, %p195_p5 }
  0xe8   :  { %203 = shalt.err (!%p200_p7)
}
  0xe9   :  { %s233_s10 = smov 256   ;;  %s234_s11 = smov 16  }
  0xea   :  { %136 = dma.vmem_to_hbm [thread:$0]  %s278_s28, 512, %s319_s3, [#allocation3], %s233_s10, %s233_s10, %s234_s11  }
  0xeb   :  { %s204_s14 = scalar_lea.vmem %s280_s29, 512  ;;  %p209_p9 = scmp.lt.s32.totalorder %s280_s29, %s280_s29 }
  0xec   :  { %p205_p8 = scmp.ne.s32.totalorder %s280_s29, %s204_s14  ;;  %p210_p10 = scmp.lt.s32.totalorder %s204_s14, %s204_s14 }
  0xee   :  { %p211_p11 = por %p210_p10, %p209_p9 }
  0xf0   :  { %p212_p12 = pnand %p211_p11, %p205_p8 }
  0xf2   :  { %215 = shalt.err (!%p212_p12)
}
  0xf3   :  { %s216_s17 = scalar_lea.hbm %s320_s4, 512 }
  0xf4   :  { %p217_p13 = scmp.ne.s32.totalorder %s320_s4, %s216_s17  ;;  %p220_p0 = scmp.lt.u32.totalorder %s216_s17, %s320_s4 }
  0xf6   :  { %p222_p1 = pnand %p220_p0, %p217_p13 }
  0xf8   :  { %225 = shalt.err (!%p222_p1)
}
  0xf9   :  { %148 = dma.vmem_to_hbm [thread:$0]  %s280_s29, 512, %s320_s4, [#allocation5], %s233_s10, %s233_s10, %s234_s11  }
  0xfa   :  { %226 = dma.done.wait [#allocation3], 512  }
  0xfb   :  { %227 = vsyncadd [#allocation3], 4294966784 }
  0xfc   :  { %228 = dma.done.wait [#allocation5], 512  }
  0xfd   :  { %229 = vsyncadd [#allocation5], 4294966784 }
  0xfe   :  { %155 = vsyncpa [#allocation3], 1 }
  0xff   :  { %156 = vsyncpa [#allocation5], 1 }

// kernel: ada_llama_head_forward.2
= control target key start
LH: loop header
LB: loop body
LE: loop exit
PB: predicated region body
PF: predicated region fallthrough
CT: control target
= control target key end

     0   :  { %vm19_vm0 = vcmask 261120   ;;  %v336_v0 = vmov 0.0   ;;  %vm337_vm1 = vmmov 0   ;;  %vm201_vm2 = vcmask 785408   ;;  %s396_s1 = inlined_call_operand.vmem [shape: bf16[32,96], index: 1, kind: input, shape index: {}]   ;;  %s397_s0 = inlined_call_operand.vmem [shape: bf16[16,32], index: 0, kind: input, shape index: {}]   ;;  %s398_s2 = inlined_call_operand.vmem [shape: bf16[96,32], index: 2, kind: input, shape index: {}]   ;;  %s399_s3 = inlined_call_operand.vmem [shape: bf16[16,32], index: 3, kind: output, shape index: {}]  }
   0x1   :  { %297 = vmatprep.subr.bf16.mxu0 %v336_v0  ;;  %v323_v1 = vld [vmem:[%s396_s1] sm:$0xff]   ;;  %301 = vmatprep.mubr.msk.bf16.mxu0 %vm337_vm1, %v336_v0  ;;  %20 = vst.msk [vmem:[#allocation2] sm:$0xff] %vm19_vm0, %v336_v0  ;;  %21 = vst.msk [vmem:[#allocation2 + $0x8] sm:$0xff] %vm19_vm0, %v336_v0  ;;  %v324_v2 = vld [vmem:[%s396_s1 + $0x8] sm:$0xff]   ;;  %vm263_vm3 = vcmask 257024  }
   0x2   :  { %305 = vmatprep.subr.bf16.mxu1 %v336_v0  ;;  %317 = vmatprep.mubr.msk.bf16.mxu1 %vm337_vm1, %v336_v0  ;;  %v325_v3 = vld [vmem:[%s397_s0] sm:$0xff]   ;;  %v327_v5 = vld [vmem:[%s398_s2 + $0x8] sm:$0xff]   ;;  %v328_v6 = vld [vmem:[%s398_s2 + $0x10] sm:$0xff]  }
   0x3   :  { %298 = vmatpush3.bf16.msra.mxu0 %v323_v1  ;;  %v326_v4 = vld [vmem:[%s398_s2] sm:$0xff]   ;;  %v329_v7 = vld [vmem:[%s398_s2 + $0x18] sm:$0xff]   ;;  %v331_v9 = vld [vmem:[%s398_s2 + $0x28] sm:$0xff]  }
   0x4   :  { %299 = vmatprep.subr.bf16.mxu0 %v336_v0  ;;  %306 = vmatpush3.bf16.msra.mxu1 %v326_v4  ;;  %v330_v8 = vld [vmem:[%s398_s2 + $0x20] sm:$0xff]  }
   0x5   :  { %307 = vmatprep.subr.bf16.mxu1 %v336_v0 }
   0x7   :  { %300 = vmatpush3.bf16.msra.mxu0 %v324_v2 }
   0x8   :  { %308 = vmatpush3.bf16.msra.mxu1 %v327_v5 }
   0x9   :  { %309 = vmatprep.subr.bf16.mxu1 %v336_v0 }
   0xa   :  { %302 = vmatmul.mubr.msk.bf16.vlgmr.msra.gmra.mrb[0].mxu0 %vm19_vm0, %v325_v3 }
   0xc   :  { %310 = vmatpush3.bf16.msra.mxu1 %v328_v6 }
   0xd   :  { %311 = vmatprep.subr.bf16.mxu1 %v336_v0 }
  0x10   :  { %312 = vmatpush3.bf16.msra.mxu1 %v329_v7 }
  0x11   :  { %313 = vmatprep.subr.bf16.mxu1 %v336_v0 }
  0x14   :  { %314 = vmatpush3.bf16.msra.mxu1 %v330_v8 }
  0x15   :  { %315 = vmatprep.subr.bf16.mxu1 %v336_v0 }
  0x18   :  { %316 = vmatpush3.bf16.msra.mxu1 %v331_v9  ;;  %v150_v9 = vld [vmem:[#allocation2] sm:$0xff] }
  0xdd   :  { %v83_v10 = vpop.f32.mrb[0].mxu0 }
  0xde   :  { %v92_v11 = vmul.f32 0.70710677, %v83_v10  ;;  %v303_v12 = vpop.f32.mrb[1].mxu0  ;;  %v90_v3 = vmul.f32 0.5, %v83_v10 }
  0xdf   :  { %v86_v13 = vpop.f32.mrb[2].mxu0  ;;  %v151_v12 = vld [vmem:[#allocation2 + $0x8] sm:$0xff] }
  0xe0   :  { %v274_v14 = vclamps-f32 %v92_v11, 4.0  ;;  %v93_v15 = vmul.f32 0.70710677, %v86_v13  ;;  %v304_v16 = vpop.f32.mrb[3].mxu0  ;;  %v91_v4 = vmul.f32 0.5, %v86_v13 }
  0xe2   :  { %v98_v17 = vmul.f32 %v274_v14, %v274_v14  ;;  %v275_v18 = vclamps-f32 %v93_v15, 4.0 }
  0xe4   :  { %v100_v19 = vmul.f32 -2.7261424e-10, %v98_v17  ;;  %v126_v20 = vmul.f32 -1.45660715e-05, %v98_v17  ;;  %v99_v21 = vmul.f32 %v275_v18, %v275_v18 }
  0xe6   :  { %v102_v22 = vadd.f32 2.7706815e-08, %v100_v19  ;;  %v128_v23 = vadd.f32 -0.00021337405, %v126_v20  ;;  %v101_v24 = vmul.f32 -2.7261424e-10, %v99_v21 }
  0xe7   :  { %v127_v25 = vmul.f32 -1.45660715e-05, %v99_v21 }
  0xe8   :  { %v104_v26 = vmul.f32 %v102_v22, %v98_v17  ;;  %v130_v27 = vmul.f32 %v128_v23, %v98_v17  ;;  %v103_v28 = vadd.f32 2.7706815e-08, %v101_v24 }
  0xe9   :  { %v129_v29 = vadd.f32 -0.00021337405, %v127_v25 }
  0xea   :  { %v106_v30 = vadd.f32 -2.101024e-06, %v104_v26  ;;  %v132_v31 = vadd.f32 -0.001682827, %v130_v27  ;;  %v105_v32 = vmul.f32 %v103_v28, %v99_v21 }
  0xeb   :  { %v131_v33 = vmul.f32 %v129_v29, %v99_v21 }
  0xec   :  { %v108_v34 = vmul.f32 %v106_v30, %v98_v17  ;;  %v134_v35 = vmul.f32 %v132_v31, %v98_v17  ;;  %v107_v36 = vadd.f32 -2.101024e-06, %v105_v32 }
  0xed   :  { %v133_v37 = vadd.f32 -0.001682827, %v131_v33 }
  0xee   :  { %v110_v38 = vadd.f32 -5.6925062e-05, %v108_v34  ;;  %v136_v39 = vadd.f32 -0.0073733293, %v134_v35  ;;  %v109_v40 = vmul.f32 %v107_v36, %v99_v21 }
  0xef   :  { %v135_v41 = vmul.f32 %v133_v37, %v99_v21 }
  0xf0   :  { %v112_v42 = vmul.f32 %v110_v38, %v98_v17  ;;  %v138_v43 = vmul.f32 %v136_v39, %v98_v17  ;;  %v111_v44 = vadd.f32 -5.6925062e-05, %v109_v40 }
  0xf1   :  { %v137_v45 = vadd.f32 -0.0073733293, %v135_v41 }
  0xf2   :  { %v114_v46 = vadd.f32 -0.00073499064, %v112_v42  ;;  %v140_v47 = vadd.f32 -0.014264739, %v138_v43  ;;  %v113_v48 = vmul.f32 %v111_v44, %v99_v21 }
  0xf3   :  { %v139_v49 = vmul.f32 %v137_v45, %v99_v21 }
  0xf4   :  { %v116_v50 = vmul.f32 %v114_v46, %v98_v17  ;;  %332 = vrcp.f32 %v140_v47  ;;  %v115_v51 = vadd.f32 -0.00073499064, %v113_v48 }
  0xf5   :  { %v141_v52 = vadd.f32 -0.014264739, %v139_v49 }
  0xf6   :  { %v118_v53 = vadd.f32 -0.0029546, %v116_v50  ;;  %v117_v54 = vmul.f32 %v115_v51, %v99_v21 }
  0xf7   :  { %334 = vrcp.f32 %v141_v52 }
  0xf8   :  { %v120_v55 = vmul.f32 %v118_v53, %v98_v17  ;;  %v119_v56 = vadd.f32 -0.0029546, %v117_v54 }
  0xfa   :  { %v122_v57 = vadd.f32 -0.016096033, %v120_v55  ;;  %v121_v58 = vmul.f32 %v119_v56, %v99_v21 }
  0xfc   :  { %v124_v59 = vmul.f32 %v274_v14, %v122_v57  ;;  %v123_v60 = vadd.f32 -0.016096033, %v121_v58 }
  0xfe   :  { %v333_v61 = vpop.eup %332  ;;  %v125_v62 = vmul.f32 %v275_v18, %v123_v60 }
  0xff   :  { %v144_v63 = vmul.f32 %v333_v61, %v124_v59 }
 0x101   :  { %v335_v0 = vpop.eup %334  ;;  %v146_v1 = vadd.f32 1.0, %v144_v63 }
 0x102   :  { %v145_v2 = vmul.f32 %v335_v0, %v125_v62 }
 0x103   :  { %v148_v6 = vmul.f32 %v146_v1, %v90_v3 }
 0x104   :  { %v147_v5 = vadd.f32 1.0, %v145_v2 }
 0x106   :  { %v149_v7 = vmul.f32 %v147_v5, %v91_v4 }
 0x108   :  { %v152_v8 = vpack.c.bf16 %v149_v7, %v148_v6 }
 0x10a   :  { %318 = vmatmul.mubr.msk.bf16.vlgmr.msra.gmra.mrb[0].mxu1 %vm201_vm2, %v152_v8 }
 0x1dd   :  { %v239_v11 = vpop.f32.mrb[0].mxu1 }
 0x1de   :  { %v246_v15 = vadd.f32 %v239_v11, %v150_v9  ;;  %v319_v14 = vpop.f32.mrb[1].mxu1 }
 0x1df   :  { %v242_v16 = vpop.f32.mrb[2].mxu1 }
 0x1e0   :  { %248 = vst.msk [vmem:[#allocation2] sm:$0xff] %vm19_vm0, %v246_v15  ;;  %v247_v17 = vadd.f32 %v242_v16, %v151_v12  ;;  %v320_v18 = vpop.f32.mrb[3].mxu1 }
 0x1e2   :  { %249 = vst.msk [vmem:[#allocation2 + $0x8] sm:$0xff] %vm19_vm0, %v247_v17 }
 0x1e7   :  { %v253_v10 = vld [vmem:[#allocation2] sm:$0xff] }
 0x1e8   :  { %v285_v13 = vpack.c.bf16 %v253_v10, %v253_v10 }
 0x1e9   :  { %v254_v19 = vld [vmem:[#allocation2 + $0x8] sm:$0xff] }
 0x1ea   :  { %264 = vst.msk [vmem:[%s399_s3] sm:$0xf] %vm263_vm3, %v285_v13  ;;  %v286_v20 = vpack.c.bf16 %v254_v19, %v254_v19 }
 0x1ec   :  { %265 = vst.msk [vmem:[%s399_s3 + $0x4] sm:$0xf] %vm263_vm3, %v286_v20 }

</bundles_post_ra>
